<compile_context>
chip_gen: v5e
topology: v5e:2x2
jax: 0.10.0
libtpu: 0.0.40
codegen_flags: <defaults>
</compile_context>

<pallas_src>
import functools
import math

import jax
import jax.numpy as jnp
from jax.experimental import pallas as pl
from jax.experimental.pallas import tpu as pltpu


def _round_up(x, m):
    return (x + m - 1) // m * m


def _cdiv(a, b):
    return -(-a // b)


# ----------------------------------------------------------------------------
# Fused MLP kernel: all layers in one kernel invocation.
# ----------------------------------------------------------------------------
def _mlp_fused_kernel(*refs, num_layers, final_tanh):
    # refs = (x_ref, w0, b0, w1, b1, ..., w_{L-1}, b_{L-1}, o_ref)
    #   x_ref : (Bblk, K)            activations tile (batch on sublanes), f32
    #   w_i   : (Pin_i, Pout_i)      per-layer lane-padded weight, bf16
    #   b_i   : (1, Pout_i)          per-layer lane-padded bias, f32
    #   o_ref : (Bblk, Pout_{L-1})   f32
    x_ref, o_ref = refs[0], refs[-1]
    h = x_ref[...]
    for i in range(num_layers):                      # static unroll; L is tiny
        w_ref = refs[1 + 2 * i]
        b_ref = refs[2 + 2 * i]
        # MXU gets bf16 operands (full-rate path on all chips); f32 accumulate.
        h = jnp.dot(h.astype(jnp.bfloat16), w_ref[...],
                    preferred_element_type=jnp.float32)
        h = h + b_ref[...]                           # (B, Pout)+(1, Pout) VPU f32
        if i < num_layers - 1 or final_tanh:
            h = jnp.tanh(h)                          # EUP, f32
    o_ref[...] = h.astype(o_ref.dtype)


# ----------------------------------------------------------------------------
# Parameter init — mirrors nn.Linear default weight scale
# U(-1/sqrt(fan_in), 1/sqrt(fan_in)) and zero biases.  Per-layer padding.
# ----------------------------------------------------------------------------
def init_mlp_params(key, layers):
    num_layers = len(layers) - 1
    in_dim = layers[0]
    # Contraction dim of layer i must match the padded output of layer i-1;
    # layer 0 contracts the raw (unpadded) input dim.
    pads = (in_dim,) + tuple(_round_up(d, 128) for d in layers[1:])
    ws, bs = [], []
    for i, (fan_in, fan_out) in enumerate(zip(layers[:-1], layers[1:])):
        key, wkey = jax.random.split(key)
        bound = 1.0 / math.sqrt(fan_in)
        w = jax.random.uniform(wkey, (fan_in, fan_out), dtype=jnp.float32,
                               minval=-bound, maxval=bound)
        w_pad = jnp.zeros((pads[i], pads[i + 1]), jnp.float32)
        w_pad = w_pad.at[:fan_in, :fan_out].set(w)
        ws.append(w_pad.astype(jnp.bfloat16))        # bf16 MXU operands
        bs.append(jnp.zeros((1, pads[i + 1]), jnp.float32))  # zero-init biases
    return {
        "w": ws,                 # list of (Pin_i, Pout_i) bf16
        "b": bs,                 # list of (1, Pout_i) f32
        "layers": tuple(layers),
        "pads": pads,
        "num_layers": num_layers,
    }


def _weight_bytes(params):
    return (sum(int(w.size) * w.dtype.itemsize for w in params["w"])
            + sum(int(b.size) * b.dtype.itemsize for b in params["b"]))


def _vmem_limit_bytes(block_m, pads, weight_bytes):
    # weights (x2 if double-buffered) + in/out tiles + live f32 activation temps,
    # with headroom.  Clamp to [32 MiB (>= default scoped), 64 MiB (v7x physical)].
    act = block_m * max(pads) * 4
    est = 2 * weight_bytes + 8 * act + (4 << 20)
    return int(min(64 << 20, max(32 << 20, est)))


# ----------------------------------------------------------------------------
# Forward pass (matches MLP.forward semantics).
# ----------------------------------------------------------------------------
_MAX_BLOCK_M = 1024        # max batch tile; amortizes ~0.35us/step overhead
_SMALL_BATCH_MAX = 256     # <= this: grid-free path (above: 2-TC parallel grid)


def mlp_forward(params, x0, *, output_activation=None, output_squeeze=False):
    ws, bs = params["w"], params["b"]
    layers, pads = params["layers"], params["pads"]
    num_layers = params["num_layers"]
    in_dim, out_dim = layers[0], layers[-1]
    out_pad = pads[-1]

    B, K = x0.shape
    assert K == in_dim, f"expected input dim {in_dim}, got {K}"

    # Only tanh is fused in-kernel as an output activation.
    final_tanh = output_activation is not None and output_activation in (
        jnp.tanh, getattr(jax.nn, "tanh", None))
    kernel = functools.partial(
        _mlp_fused_kernel, num_layers=num_layers, final_tanh=final_tanh)

    wb_args = []
    for w, b in zip(ws, bs):
        wb_args += [w, b]
    weight_bytes = _weight_bytes(params)

    if B <= _SMALL_BATCH_MAX:
        # Small batch: grid-free, full-extent VMEM specs.  Only the batch axis
        # (rows) may need padding to a sublane multiple — never the lanes.
        b_pad = _round_up(max(B, 8), 8)
        x_in = x0 if b_pad == B else jnp.pad(x0, ((0, b_pad - B), (0, 0)))
        y_pad = pl.pallas_call(
            kernel,
            out_shape=jax.ShapeDtypeStruct((b_pad, out_pad), jnp.float32),
            in_specs=[pl.BlockSpec(memory_space=pltpu.MemorySpace.VMEM)
                      for _ in range(1 + 2 * num_layers)],
            out_specs=pl.BlockSpec(memory_space=pltpu.MemorySpace.VMEM),
            compiler_params=pltpu.CompilerParams(
                vmem_limit_bytes=_vmem_limit_bytes(b_pad, pads, weight_bytes)),
        )(x_in, *wb_args)
    else:
        # Large batch (rollout-sized): tile the batch axis with an EVEN number
        # of blocks so v7x's two TensorCores each get equal work; block size is
        # as large as possible (<= _MAX_BLOCK_M) to amortize per-step overhead.
        n_blocks = max(2, _cdiv(B, _MAX_BLOCK_M))
        if n_blocks % 2:
            n_blocks += 1
        block_m = _round_up(_cdiv(B, n_blocks), 8)
        b_pad = n_blocks * block_m                  # pads < 8*n_blocks rows
        x_in = x0 if b_pad == B else jnp.pad(x0, ((0, b_pad - B), (0, 0)))

        # Weights/biases: constant index_map -> VMEM-resident across the grid.
        # If the slab is big (large obs/hidden dims on v7x's 64 MiB VMEM), pin
        # to single-buffering; otherwise default pipelining (tiny slabs).
        big_slab = weight_bytes > (4 << 20)

        def _const_spec(shape):
            idx = lambda i: (0,) * len(shape)
            if big_slab:
                return pl.BlockSpec(shape, idx, pipeline_mode=pl.Buffered(1))
            return pl.BlockSpec(shape, idx)

        in_specs = [pl.BlockSpec((block_m, K), lambda i: (i, 0))]
        for w, b in zip(ws, bs):
            in_specs.append(_const_spec(w.shape))
            in_specs.append(_const_spec(b.shape))

        y_pad = pl.pallas_call(
            kernel,
            out_shape=jax.ShapeDtypeStruct((b_pad, out_pad), jnp.float32),
            grid=(n_blocks,),
            in_specs=in_specs,
            out_specs=pl.BlockSpec((block_m, out_pad), lambda i: (i, 0)),
            compiler_params=pltpu.CompilerParams(
                dimension_semantics=("parallel",),
                vmem_limit_bytes=_vmem_limit_bytes(block_m, pads, weight_bytes)),
        )(x_in, *wb_args)

    y = y_pad[:B, :out_dim]

    if output_activation is not None and not final_tanh:
        # TODO(synk): arbitrary output_activation callables are applied outside
        # the kernel (glue); only tanh/None are fused in-kernel.
        y = output_activation(y)

    # PyTorch .squeeze() removes ALL size-1 dims; jnp.squeeze matches that.
    return jnp.squeeze(y) if output_squeeze else y


# ----------------------------------------------------------------------------
# Reference (plain JAX) for correctness checks — same bf16 weights / f32 accum.
# ----------------------------------------------------------------------------
def _mlp_reference(params, x0):
    layers = params["layers"]
    num_layers = params["num_layers"]
    h = x0
    for i in range(num_layers):
        w = params["w"][i][:layers[i], :layers[i + 1]]
        b = params["b"][i][:, :layers[i + 1]]
        h = jnp.dot(h.astype(jnp.bfloat16), w,
                    preferred_element_type=jnp.float32) + b
        if i < num_layers - 1:
            h = jnp.tanh(h)
    return h


if __name__ == "__main__":
    key = jax.random.PRNGKey(0)

    # Small shapes typical of a PPO MLP: obs_dim=16 -> 32 -> 32 -> 4
    layers = [16, 32, 32, 4]

    key, pkey, xkey, xkey2 = jax.random.split(key, 4)
    params = init_mlp_params(pkey, layers)

    # --- Path 1: small batch (grid-free, full-VMEM call) --------------------
    batch = 8
    x_small = jax.random.normal(xkey, (batch, layers[0]), dtype=jnp.float32)
    out_small = jax.block_until_ready(mlp_forward(params, x_small))
    ref_small = _mlp_reference(params, x_small)
    assert out_small.shape == (batch, layers[-1])
    assert jnp.allclose(out_small, ref_small, atol=1e-2, rtol=1e-2), (
        float(jnp.max(jnp.abs(out_small - ref_small))))

    # --- Path 2: large batch (even, batch-parallel grid; uneven B -> tiny pad)
    big_batch = 1500
    x_big = jax.random.normal(xkey2, (big_batch, layers[0]), dtype=jnp.float32)
    out_big = jax.block_until_ready(mlp_forward(params, x_big))
    ref_big = _mlp_reference(params, x_big)
    assert out_big.shape == (big_batch, layers[-1])
    assert jnp.allclose(out_big, ref_big, atol=1e-2, rtol=1e-2), (
        float(jnp.max(jnp.abs(out_big - ref_big))))

    print("KERNEL_OK")
</pallas_src>

<mosaic_0001>
module attributes {stable_mosaic.version = 11 : i64} {
  func.func @_mlp_fused_kernel(%arg0: memref<8x16xf32, #tpu.memory_space<vmem>>, %arg1: memref<16x128xbf16, #tpu.memory_space<vmem>>, %arg2: memref<1x128xf32, #tpu.memory_space<vmem>>, %arg3: memref<128x128xbf16, #tpu.memory_space<vmem>>, %arg4: memref<1x128xf32, #tpu.memory_space<vmem>>, %arg5: memref<128x128xbf16, #tpu.memory_space<vmem>>, %arg6: memref<1x128xf32, #tpu.memory_space<vmem>>, %arg7: memref<8x128xf32, #tpu.memory_space<vmem>>) attributes {dimension_semantics = [], scalar_prefetch = 0 : i64, scratch_operands = 0 : i64, tpu.core_type = #tpu.core_type<tc>} {
    %c0 = arith.constant 0 : index
    %c0_0 = arith.constant 0 : index
    %0 = vector.load %arg0[%c0, %c0_0] : memref<8x16xf32, #tpu.memory_space<vmem>>, vector<8x16xf32>
    %1 = arith.truncf %0 : vector<8x16xf32> to vector<8x16xbf16>
    %c0_1 = arith.constant 0 : index
    %c0_2 = arith.constant 0 : index
    %2 = vector.load %arg1[%c0_1, %c0_2] : memref<16x128xbf16, #tpu.memory_space<vmem>>, vector<16x128xbf16>
    %cst = arith.constant dense<0.000000e+00> : vector<8x128xf32>
    %3 = tpu.matmul %1, %2, %cst {dimension_numbers = #tpu.dot_dimension_numbers<[1], [0], [0], [1], [0, 0, 1, 1], [], []>} : vector<8x16xbf16>, vector<16x128xbf16>, vector<8x128xf32> -> vector<8x128xf32>
    %c0_3 = arith.constant 0 : index
    %c0_4 = arith.constant 0 : index
    %4 = vector.load %arg2[%c0_3, %c0_4] : memref<1x128xf32, #tpu.memory_space<vmem>>, vector<1x128xf32>
    %5 = vector.broadcast %4 : vector<1x128xf32> to vector<8x128xf32>
    %6 = arith.addf %3, %5 : vector<8x128xf32>
    %7 = math.tanh %6 : vector<8x128xf32>
    %8 = arith.truncf %7 : vector<8x128xf32> to vector<8x128xbf16>
    %c0_5 = arith.constant 0 : index
    %c0_6 = arith.constant 0 : index
    %9 = vector.load %arg3[%c0_5, %c0_6] : memref<128x128xbf16, #tpu.memory_space<vmem>>, vector<128x128xbf16>
    %cst_7 = arith.constant dense<0.000000e+00> : vector<8x128xf32>
    %10 = tpu.matmul %8, %9, %cst_7 {dimension_numbers = #tpu.dot_dimension_numbers<[1], [0], [0], [1], [0, 0, 1, 1], [], []>} : vector<8x128xbf16>, vector<128x128xbf16>, vector<8x128xf32> -> vector<8x128xf32>
    %c0_8 = arith.constant 0 : index
    %c0_9 = arith.constant 0 : index
    %11 = vector.load %arg4[%c0_8, %c0_9] : memref<1x128xf32, #tpu.memory_space<vmem>>, vector<1x128xf32>
    %12 = vector.broadcast %11 : vector<1x128xf32> to vector<8x128xf32>
    %13 = arith.addf %10, %12 : vector<8x128xf32>
    %14 = math.tanh %13 : vector<8x128xf32>
    %15 = arith.truncf %14 : vector<8x128xf32> to vector<8x128xbf16>
    %c0_10 = arith.constant 0 : index
    %c0_11 = arith.constant 0 : index
    %16 = vector.load %arg5[%c0_10, %c0_11] : memref<128x128xbf16, #tpu.memory_space<vmem>>, vector<128x128xbf16>
    %cst_12 = arith.constant dense<0.000000e+00> : vector<8x128xf32>
    %17 = tpu.matmul %15, %16, %cst_12 {dimension_numbers = #tpu.dot_dimension_numbers<[1], [0], [0], [1], [0, 0, 1, 1], [], []>} : vector<8x128xbf16>, vector<128x128xbf16>, vector<8x128xf32> -> vector<8x128xf32>
    %c0_13 = arith.constant 0 : index
    %c0_14 = arith.constant 0 : index
    %18 = vector.load %arg6[%c0_13, %c0_14] : memref<1x128xf32, #tpu.memory_space<vmem>>, vector<1x128xf32>
    %19 = vector.broadcast %18 : vector<1x128xf32> to vector<8x128xf32>
    %20 = arith.addf %17, %19 : vector<8x128xf32>
    %c0_15 = arith.constant 0 : index
    %c0_16 = arith.constant 0 : index
    %21 = vector.load %arg7[%c0_15, %c0_16] : memref<8x128xf32, #tpu.memory_space<vmem>>, vector<8x128xf32>
    tpu.vector_store %arg7[%c0_15, %c0_16], %20 {strides = array<i32>} : memref<8x128xf32, #tpu.memory_space<vmem>>, vector<8x128xf32>,
    return
  }
}

</mosaic_0001>

<bundles_post_ra>
// kernel: tpu_custom_call.1
= control target key start
LH: loop header
LB: loop body
LE: loop exit
PB: predicated region body
PF: predicated region fallthrough
CT: control target
= control target key end

     0   :  { %12 = vsyncpa [#allocation3], 0  ;;  %s605_s0 = inlined_call_operand.hbm [shape: f32[8,16], index: 0, kind: input, shape index: {}]   ;;  %s606_s1 = inlined_call_operand.hbm [shape: bf16[16,128], index: 1, kind: input, shape index: {}]   ;;  %s607_s2 = inlined_call_operand.vmem [shape: f32[1,128], index: 2, kind: input, shape index: {}]   ;;  %s608_s3 = inlined_call_operand.hbm [shape: bf16[128,128], index: 3, kind: input, shape index: {}]   ;;  %s609_s4 = inlined_call_operand.vmem [shape: f32[1,128], index: 4, kind: input, shape index: {}]   ;;  %s610_s5 = inlined_call_operand.hbm [shape: bf16[128,128], index: 5, kind: input, shape index: {}]   ;;  %s611_s6 = inlined_call_operand.vmem [shape: f32[1,128], index: 6, kind: input, shape index: {}]   ;;  %s612_s7 = inlined_call_operand.hbm [shape: f32[8,128], index: 7, kind: output, shape index: {}]  }
   0x1   :  { %13 = vsyncpa [#allocation6], 0 }
   0x2   :  { %14 = vsyncpa [#allocation9], 0  ;;  %s31_s26 = sshll.u32 %s606_s1, 4  ;;  %s32_s26 = int_to_ptr.hbm [resolvable:$true] %s31_s26 }
   0x3   :  { %15 = vsyncpa [#allocation4], 0  ;;  %s534_s27 = smov [#allocation5]   ;;  %s21_s8 = sshll.u32 %s605_s0, 4  ;;  %s22_s8 = int_to_ptr.hbm [resolvable:$true] %s21_s8 }
   0x4   :  { %s33_s28 = sshll.u32 %s534_s27, 4  ;;  %s535_s9 = smov 64   ;;  %s34_s28 = int_to_ptr.vmem [resolvable:$true] %s33_s28 }
   0x5   :  { %s536_s10 = smov 4   ;;  %s537_s11 = smov [#allocation2]  }
   0x6   :  { %39 = dma.hbm_to_vmem [thread:$0]  %s32_s26, 128, %s34_s28, [#allocation6], %s535_s9, %s535_s9, %s536_s10  }
   0x7   :  { %s23_s12 = sshll.u32 %s537_s11, 4  ;;  %s46_s15 = sshll.u32 %s608_s3, 4  ;;  %s24_s12 = int_to_ptr.vmem [resolvable:$true] %s23_s12  ;;  %s47_s15 = int_to_ptr.hbm [resolvable:$true] %s46_s15 }
   0x8   :  { %26 = dma.hbm_to_vmem [thread:$0]  %s22_s8, 128, %s24_s12, [#allocation3]  }
   0x9   :  { %s61_s17 = sshll.u32 %s610_s5, 4  ;;  %s538_s18 = smov [#allocation7]   ;;  %s62_s17 = int_to_ptr.hbm [resolvable:$true] %s61_s17 }
   0xa   :  { %s48_s19 = sshll.u32 %s538_s18, 4  ;;  %s539_s0 = smov [#allocation8]   ;;  %s49_s19 = int_to_ptr.vmem [resolvable:$true] %s48_s19 }
   0xb   :  { %54 = dma.hbm_to_vmem [thread:$0]  %s47_s15, 1024, %s49_s19, [#allocation6], %s535_s9, %s535_s9, %s536_s10  }
   0xc   :  { %s63_s20 = sshll.u32 %s539_s0, 4  ;;  %s64_s20 = int_to_ptr.vmem [resolvable:$true] %s63_s20 }
   0xd   :  { %69 = dma.hbm_to_vmem [thread:$0]  %s62_s17, 1024, %s64_s20, [#allocation9], %s535_s9, %s535_s9, %s536_s10  }
   0xe   :  { %526 = dma.done.wait [#allocation3], 128  }
   0xf   :  { %527 = vsyncadd [#allocation3], 4294967168 }
  0x10   :  { %528 = dma.done.wait [#allocation6], 1152  }
  0x11   :  { %529 = vsyncadd [#allocation6], 4294966144 }
  0x12   :  { %530 = dma.done.wait [#allocation9], 1024  }
  0x13   :  { %531 = vsyncadd [#allocation9], 4294966272  ;;  %v375_v0 = vld [vmem:[#allocation5] sm:$0xff]  ;;  %v89_v1 = vld [vmem:[#allocation2] sm:$0xff]  ;;  %vm103_vm0 = vcmask 130048   ;;  %s540_s24 = smov [#allocation10]  }
  0x14   :  { %v383_v2 = vld [vmem:[#allocation7 + $0x38] sm:$0xff]  ;;  %v90_v3 = vpack.c.bf16 %v89_v1, %v89_v1  ;;  %114 = vmatpush.bf16.msra.mxu0 %v375_v0  ;;  %v382_v4 = vld [vmem:[#allocation7 + $0x30] sm:$0xff]  ;;  %v381_v5 = vld [vmem:[#allocation7 + $0x28] sm:$0xff]  ;;  %s292_s25 = sshll.u32 %s540_s24, 4  ;;  %s294_s28 = sshll.u32 %s612_s7, 4  ;;  %s293_s25 = int_to_ptr.vmem [resolvable:$true] %s292_s25  ;;  %s295_s28 = int_to_ptr.hbm [resolvable:$true] %s294_s28 }
  0x15   :  { %190 = vmatpush.bf16.msra.mxu1 %v383_v2  ;;  %v380_v6 = vld [vmem:[#allocation7 + $0x20] sm:$0xff]  ;;  %v379_v7 = vld [vmem:[#allocation7 + $0x18] sm:$0xff]  ;;  %v378_v8 = vld [vmem:[#allocation7 + $0x10] sm:$0xff] }
  0x16   :  { %v377_v9 = vld [vmem:[#allocation7 + $0x8] sm:$0xff]  ;;  %v376_v10 = vld [vmem:[#allocation7] sm:$0xff]  ;;  %v391_v11 = vld [vmem:[#allocation8 + $0x38] sm:$0xff] }
  0x17   :  { %310 = vmatmul.msk.bf16.vlgmr.msra.gmra.mxu0 %vm103_vm0, %v90_v3  ;;  %273 = vmatpush.bf16.msra.mxu2 %v391_v11  ;;  %v390_v12 = vld [vmem:[#allocation8 + $0x30] sm:$0xff]  ;;  %v389_v13 = vld [vmem:[#allocation8 + $0x28] sm:$0xff]  ;;  %v388_v14 = vld [vmem:[#allocation8 + $0x20] sm:$0xff] }
  0x18   :  { %v387_v15 = vld [vmem:[#allocation8 + $0x18] sm:$0xff]  ;;  %v399_v16 = vld [vmem:[%s607_s2] ss:$0 sm:$0xff]  ;;  %v385_v23 = vld [vmem:[#allocation8 + $0x8] sm:$0xff] }
  0x19   :  { %191 = vmatpush.bf16.msra.mxu1 %v382_v4  ;;  %v386_v22 = vld [vmem:[#allocation8 + $0x10] sm:$0xff]  ;;  %v384_v24 = vld [vmem:[#allocation8] sm:$0xff] }
  0x1a   :  { %v400_v25 = vld [vmem:[%s609_s4] ss:$0 sm:$0xff] }
  0x1b   :  { %274 = vmatpush.bf16.msra.mxu2 %v390_v12  ;;  %v401_v31 = vld [vmem:[%s611_s6] ss:$0 sm:$0xff] }
  0x1d   :  { %192 = vmatpush.bf16.msra.mxu1 %v381_v5 }
  0x1f   :  { %275 = vmatpush.bf16.msra.mxu2 %v389_v13 }
  0x21   :  { %193 = vmatpush.bf16.msra.mxu1 %v380_v6 }
  0x23   :  { %276 = vmatpush.bf16.msra.mxu2 %v388_v14 }
  0x25   :  { %194 = vmatpush.bf16.msra.mxu1 %v379_v7 }
  0x27   :  { %277 = vmatpush.bf16.msra.mxu2 %v387_v15 }
  0x29   :  { %195 = vmatpush.bf16.msra.mxu1 %v378_v8 }
  0x2b   :  { %278 = vmatpush.bf16.msra.mxu2 %v386_v22 }
  0x2d   :  { %196 = vmatpush.bf16.msra.mxu1 %v377_v9 }
  0x2f   :  { %279 = vmatpush.bf16.msra.mxu2 %v385_v23 }
  0x31   :  { %197 = vmatpush.bf16.msra.mxu1 %v376_v10 }
  0x33   :  { %280 = vmatpush.bf16.msra.mxu2 %v384_v24 }
  0x94   :  { %v116_v17 = vpop.f32.mrf.mxu0 }
  0x95   :  { %v117_v18 = vadd.f32 %v399_v16, %v116_v17 }
  0x97   :  { %402 = vtanh.f32 %v117_v18 }
  0x9c   :  { %v118_v19 = vpop.f32.mrf.mxu0 }
  0x9d   :  { %v403_v20 = vpop.eup %402 }
  0x9e   :  { %v121_v21 = vpack.c.bf16 %v403_v20, %v403_v20 }
  0xa0   :  { %198 = vmatmul.bf16.vlgmr.msra.gmra.mxu1 %v121_v21 }
 0x11d   :  { %v199_v26 = vpop.f32.mrf.mxu1 }
 0x11e   :  { %v200_v27 = vadd.f32 %v400_v25, %v199_v26 }
 0x120   :  { %404 = vtanh.f32 %v200_v27 }
 0x125   :  { %v201_v28 = vpop.f32.mrf.mxu1 }
 0x126   :  { %v405_v29 = vpop.eup %404 }
 0x127   :  { %v204_v30 = vpack.c.bf16 %v405_v29, %v405_v29 }
 0x129   :  { %281 = vmatmul.bf16.vlgmr.msra.gmra.mxu2 %v204_v30 }
 0x1ac   :  { %v282_v32 = vpop.f32.mrf.mxu2 }
 0x1ad   :  { %v283_v33 = vadd.f32 %v401_v31, %v282_v32 }
 0x1af   :  { %286 = vst [vmem:[#allocation10] sm:$0xff] %v283_v33 }
 0x1b0   :  { %297 = dma.vmem_to_hbm [thread:$0]  %s293_s25, 128, %s295_s28, [#allocation4]  }
 0x1b4   :  { %v284_v34 = vpop.f32.mrf.mxu2 }
 0x1b5   :  { %532 = dma.done.wait [#allocation4], 128  }
 0x1b6   :  { %533 = vsyncadd [#allocation4], 4294967168 }
 0x1b7   :  { %302 = vsyncpa [#allocation3], 1 }
 0x1b8   :  { %303 = vsyncpa [#allocation6], 1 }
 0x1b9   :  { %304 = vsyncpa [#allocation9], 1 }
 0x1ba   :  { %305 = vsyncpa [#allocation4], 1 }

</bundles_post_ra>
